<compile_context>
chip_gen: v7x
topology: tpu7x:2x2x1
jax: 0.10.0
libtpu: 0.0.40
codegen_flags: <defaults>
</compile_context>

<pallas_src>
import functools

import jax
import jax.numpy as jnp
import numpy as np
from jax.experimental import pallas as pl
from jax.experimental.pallas import tpu as pltpu


# ----------------------------------------------------------------------------
# Helpers
# ----------------------------------------------------------------------------
def _round_up(x, m):
    return ((x + m - 1) // m) * m


def _device_caps():
    """Generation-aware tile caps + scoped-VMEM limit."""
    kind = ""
    try:
        kind = jax.devices()[0].device_kind.lower()
    except Exception:
        pass
    if "v6" in kind:
        # Worst flops:BW ratio -> largest tiles (~512 flop/byte intensity).
        return dict(tm=1024, tn=1024, tk=512, vmem=96 << 20)
    if "v7" in kind:
        # 64 MiB VMEM/TC, 3.2 TB/s/TC -> 512 tiles already saturate the MXU,
        # and smaller tiles keep >=2 blocks on the parallel axes for 2 TCs.
        return dict(tm=512, tn=512, tk=512, vmem=48 << 20)
    if "v5" in kind:
        return dict(tm=512, tn=512, tk=512, vmem=64 << 20)
    return dict(tm=512, tn=512, tk=512, vmem=64 << 20)


# ----------------------------------------------------------------------------
# Kernels:  y = x @ W (+ b)
# ----------------------------------------------------------------------------
def _linear_bias_kernel(x_ref, w_ref, b_ref, o_ref, acc_ref):
    # x_ref: (tm, tk)  w_ref: (tk, tn)  b_ref: (1, tn)  o_ref: (tm, tn)
    k = pl.program_id(2)

    @pl.when(k == 0)
    def _init():
        acc_ref[...] = jnp.zeros_like(acc_ref)

    acc_ref[...] += jnp.dot(
        x_ref[...], w_ref[...], preferred_element_type=jnp.float32
    )

    @pl.when(k == pl.num_programs(2) - 1)
    def _finalize():
        o_ref[...] = (acc_ref[...] + b_ref[...]).astype(o_ref.dtype)


def _linear_nobias_kernel(x_ref, w_ref, o_ref, acc_ref):
    k = pl.program_id(2)

    @pl.when(k == 0)
    def _init():
        acc_ref[...] = jnp.zeros_like(acc_ref)

    acc_ref[...] += jnp.dot(
        x_ref[...], w_ref[...], preferred_element_type=jnp.float32
    )

    @pl.when(k == pl.num_programs(2) - 1)
    def _finalize():
        o_ref[...] = acc_ref[...].astype(o_ref.dtype)


# ----------------------------------------------------------------------------
# pallas_call wrapper (operands already padded to tile multiples)
# ----------------------------------------------------------------------------
@functools.partial(
    jax.jit,
    static_argnames=("tm", "tn", "tk", "vmem_limit", "out_dtype", "has_bias"),
)
def _linear_pallas(xc, wc, b2d, *, tm, tn, tk, vmem_limit, out_dtype, has_bias):
    Mp, Kp = xc.shape
    Kp2, Np = wc.shape
    assert Kp == Kp2
    grid = (Mp // tm, Np // tn, Kp // tk)

    # Advisory cost hint: x re-streamed per N-tile pass, W per M-tile pass.
    flops = 2 * Mp * Np * Kp
    bytes_accessed = (
        Mp * Kp * xc.dtype.itemsize * grid[1]
        + Kp * Np * wc.dtype.itemsize * grid[0]
        + Mp * Np * np.dtype(out_dtype).itemsize
    )

    in_specs = [
        pl.BlockSpec((tm, tk), lambda i, j, k: (i, k)),  # x
        pl.BlockSpec((tk, tn), lambda i, j, k: (k, j)),  # W
    ]
    operands = (xc, wc)
    kernel = _linear_nobias_kernel
    if has_bias:
        in_specs.append(pl.BlockSpec((1, tn), lambda i, j, k: (0, j)))  # bias
        operands = (xc, wc, b2d)
        kernel = _linear_bias_kernel

    return pl.pallas_call(
        kernel,
        out_shape=jax.ShapeDtypeStruct((Mp, Np), out_dtype),
        grid_spec=pltpu.PrefetchScalarGridSpec(
            num_scalar_prefetch=0,
            grid=grid,
            in_specs=in_specs,
            out_specs=pl.BlockSpec((tm, tn), lambda i, j, k: (i, j)),
            scratch_shapes=[pltpu.VMEM((tm, tn), jnp.float32)],
        ),
        compiler_params=pltpu.CompilerParams(
            dimension_semantics=("parallel", "parallel", "arbitrary"),
            vmem_limit_bytes=vmem_limit,
        ),
        cost_estimate=pl.CostEstimate(
            flops=flops, transcendentals=0, bytes_accessed=bytes_accessed
        ),
    )(*operands)


# ----------------------------------------------------------------------------
# JAX equivalent of the PyTorch LinearModule
# ----------------------------------------------------------------------------
class LinearModule:
    """Mirror of `torch.nn.Linear(in_features, out_features, bias=bias)`.

    The weight is cast to the MXU compute dtype (bf16) and zero-padded to the
    N/K tile grid once at construction; forward only casts/pads the activation.
    """

    def __init__(self, in_features, out_features, bias=True, *, key,
                 compute_dtype=jnp.bfloat16):
        self.in_features = in_features
        self.out_features = out_features
        self.compute_dtype = compute_dtype
        self.has_bias = bool(bias)

        caps = _device_caps()
        self.tm_cap = caps["tm"]
        self.tn = min(caps["tn"], _round_up(out_features, 128))
        self.tk = min(caps["tk"], _round_up(in_features, 128))
        self.vmem_limit = caps["vmem"]
        Np = _round_up(out_features, self.tn)
        Kp = _round_up(in_features, self.tk)

        # torch.nn.Linear init: U(-1/sqrt(in), 1/sqrt(in)) for weight and bias.
        k1, k2 = jax.random.split(key)
        bound = 1.0 / (in_features ** 0.5)
        w = jax.random.uniform(
            k1, (out_features, in_features), jnp.float32, -bound, bound
        )
        self.w_t_f32 = jnp.transpose(w)  # (in, out), kept for reference checks

        wc = self.w_t_f32.astype(compute_dtype)
        if (Kp, Np) != (in_features, out_features):
            wc = jnp.pad(wc, ((0, Kp - in_features), (0, Np - out_features)))
        self.w_padded = wc  # (Kp, Np) in compute dtype, padded once

        if self.has_bias:
            b = jax.random.uniform(
                k2, (out_features,), jnp.float32, -bound, bound
            )
            self.b = b
            self.b_padded = jnp.pad(
                b.astype(jnp.float32), (0, Np - out_features)
            ).reshape(1, Np)
        else:
            self.b = jnp.zeros((out_features,), jnp.float32)  # for reference only
            self.b_padded = None

    def __call__(self, x):
        # torch.nn.Linear supports arbitrary leading dims: flatten / restore.
        lead = x.shape[:-1]
        x2d = x.reshape(-1, self.in_features)
        M = x2d.shape[0]
        Kp = self.w_padded.shape[0]

        # tm: multiple of 16 (bf16 sublane packing); small M -> single M tile.
        tm = min(self.tm_cap, _round_up(max(M, 1), 16))
        Mp = _round_up(M, tm)

        xc = x2d.astype(self.compute_dtype)
        if (Mp, Kp) != (M, self.in_features):
            xc = jnp.pad(xc, ((0, Mp - M), (0, Kp - self.in_features)))

        y = _linear_pallas(
            xc, self.w_padded, self.b_padded,
            tm=tm, tn=self.tn, tk=self.tk,
            vmem_limit=self.vmem_limit,
            out_dtype=x.dtype, has_bias=self.has_bias,
        )
        y = y[:M, :self.out_features]
        return y.reshape(*lead, self.out_features)


def _reference(x, w_t, b, compute_dtype=jnp.bfloat16):
    # Same bf16 rounding of operands + f32 accumulation as the kernel.
    # TODO(synk): expose a pure-f32 compute path if exact torch f32 parity is
    # required (lower MXU rate).
    xr = x.astype(compute_dtype).astype(jnp.float32)
    wr = w_t.astype(compute_dtype).astype(jnp.float32)
    return (xr @ wr + b).astype(x.dtype)


# ----------------------------------------------------------------------------
if __name__ == "__main__":
    key = jax.random.PRNGKey(0)
    k_param, k_param2, k_x, k_x2 = jax.random.split(key, 4)

    # Case 1: tile-friendly shapes, bias=True.
    batch, in_features, out_features = 16, 512, 256
    module = LinearModule(in_features, out_features, bias=True, key=k_param)
    x = jax.random.normal(k_x, (batch, in_features), jnp.float32)
    y = jax.block_until_ready(module(x))
    y_ref = _reference(x, module.w_t_f32, module.b)
    assert y.shape == (batch, out_features)
    assert jnp.allclose(y, y_ref, atol=1e-3, rtol=1e-3), (
        float(jnp.max(jnp.abs(y - y_ref)))
    )

    # Case 2: ragged shapes, 3-D leading dims, bias=False (bias-free kernel).
    module2 = LinearModule(100, 60, bias=False, key=k_param2)
    x2 = jax.random.normal(k_x2, (2, 7, 100), jnp.float32)
    y2 = jax.block_until_ready(module2(x2))
    y2_ref = _reference(
        x2.reshape(-1, 100), module2.w_t_f32, module2.b
    ).reshape(2, 7, 60)
    assert y2.shape == (2, 7, 60)
    assert jnp.allclose(y2, y2_ref, atol=1e-3, rtol=1e-3), (
        float(jnp.max(jnp.abs(y2 - y2_ref)))
    )

    print("KERNEL_OK")
</pallas_src>

<mosaic_0001>
module attributes {stable_mosaic.version = 11 : i64} {
  func.func @_linear_bias_kernel(%arg0: i32, %arg1: i32, %arg2: i32, %arg3: memref<16x512xbf16, #tpu.memory_space<vmem>>, %arg4: memref<512x256xbf16, #tpu.memory_space<vmem>>, %arg5: memref<1x256xf32, #tpu.memory_space<vmem>>, %arg6: memref<16x256xf32, #tpu.memory_space<vmem>>, %arg7: memref<16x256xf32, #tpu.memory_space<vmem>>) attributes {dimension_semantics = [#tpu.dimension_semantics<parallel>, #tpu.dimension_semantics<parallel>, #tpu.dimension_semantics<arbitrary>], iteration_bounds = array<i64: 1, 1, 1>, scalar_prefetch = 0 : i64, scratch_operands = 1 : i64, tpu.core_type = #tpu.core_type<tc>, window_params = [{transform_indices = @transform_0, window_bounds = array<i64: 16, 512>}, {transform_indices = @transform_1, window_bounds = array<i64: 512, 256>}, {transform_indices = @transform_2, window_bounds = array<i64: 1, 256>}, {transform_indices = @transform_3, window_bounds = array<i64: 16, 256>}]} {
    %c0_i32 = arith.constant 0 : i32
    %0 = arith.cmpi eq, %arg2, %c0_i32 : i32
    %1 = arith.extui %0 : i1 to i32
    %c0_i32_0 = arith.constant 0 : i32
    %2 = arith.cmpi ne, %1, %c0_i32_0 : i32
    scf.if %2 {
      %cst_10 = arith.constant 0.000000e+00 : f32
      %12 = vector.broadcast %cst_10 : f32 to vector<16x256xf32>
      %c0_11 = arith.constant 0 : index
      %c0_12 = arith.constant 0 : index
      %13 = vector.load %arg7[%c0_11, %c0_12] : memref<16x256xf32, #tpu.memory_space<vmem>>, vector<16x256xf32>
      tpu.vector_store %arg7[%c0_11, %c0_12], %12 {strides = array<i32>} : memref<16x256xf32, #tpu.memory_space<vmem>>, vector<16x256xf32>,
    } else {
    }
    %c0 = arith.constant 0 : index
    %c0_1 = arith.constant 0 : index
    %3 = vector.load %arg7[%c0, %c0_1] : memref<16x256xf32, #tpu.memory_space<vmem>>, vector<16x256xf32>
    %c0_2 = arith.constant 0 : index
    %c0_3 = arith.constant 0 : index
    %4 = vector.load %arg3[%c0_2, %c0_3] : memref<16x512xbf16, #tpu.memory_space<vmem>>, vector<16x512xbf16>
    %c0_4 = arith.constant 0 : index
    %c0_5 = arith.constant 0 : index
    %5 = vector.load %arg4[%c0_4, %c0_5] : memref<512x256xbf16, #tpu.memory_space<vmem>>, vector<512x256xbf16>
    %cst = arith.constant dense<0.000000e+00> : vector<16x256xf32>
    %6 = tpu.matmul %4, %5, %cst {dimension_numbers = #tpu.dot_dimension_numbers<[1], [0], [0], [1], [0, 0, 1, 1], [], []>} : vector<16x512xbf16>, vector<512x256xbf16>, vector<16x256xf32> -> vector<16x256xf32>
    %7 = arith.addf %3, %6 : vector<16x256xf32>
    %c0_6 = arith.constant 0 : index
    %c0_7 = arith.constant 0 : index
    %8 = vector.load %arg7[%c0_6, %c0_7] : memref<16x256xf32, #tpu.memory_space<vmem>>, vector<16x256xf32>
    tpu.vector_store %arg7[%c0_6, %c0_7], %7 {strides = array<i32>} : memref<16x256xf32, #tpu.memory_space<vmem>>, vector<16x256xf32>,
    %c0_i32_8 = arith.constant 0 : i32
    %9 = arith.cmpi eq, %arg2, %c0_i32_8 : i32
    %10 = arith.extui %9 : i1 to i32
    %c0_i32_9 = arith.constant 0 : i32
    %11 = arith.cmpi ne, %10, %c0_i32_9 : i32
    scf.if %11 {
      %c0_10 = arith.constant 0 : index
      %c0_11 = arith.constant 0 : index
      %12 = vector.load %arg7[%c0_10, %c0_11] : memref<16x256xf32, #tpu.memory_space<vmem>>, vector<16x256xf32>
      %c0_12 = arith.constant 0 : index
      %c0_13 = arith.constant 0 : index
      %13 = vector.load %arg5[%c0_12, %c0_13] : memref<1x256xf32, #tpu.memory_space<vmem>>, vector<1x256xf32>
      %14 = vector.broadcast %13 : vector<1x256xf32> to vector<16x256xf32>
      %15 = arith.addf %12, %14 : vector<16x256xf32>
      %c0_14 = arith.constant 0 : index
      %c0_15 = arith.constant 0 : index
      %16 = vector.load %arg6[%c0_14, %c0_15] : memref<16x256xf32, #tpu.memory_space<vmem>>, vector<16x256xf32>
      tpu.vector_store %arg6[%c0_14, %c0_15], %15 {strides = array<i32>} : memref<16x256xf32, #tpu.memory_space<vmem>>, vector<16x256xf32>,
    } else {
    }
    return
  }
  func.func @transform_0(%arg0: i32, %arg1: i32, %arg2: i32) -> (i32, i32) {
    %c0_i32 = arith.constant 0 : i32
    return %arg0, %arg2 : i32, i32
  }
  func.func @transform_1(%arg0: i32, %arg1: i32, %arg2: i32) -> (i32, i32) {
    %c0_i32 = arith.constant 0 : i32
    return %arg2, %arg1 : i32, i32
  }
  func.func @transform_2(%arg0: i32, %arg1: i32, %arg2: i32) -> (i32, i32) {
    %c0_i32 = arith.constant 0 : i32
    %c0_i32_0 = arith.constant 0 : i32
    return %c0_i32, %arg1 : i32, i32
  }
  func.func @transform_3(%arg0: i32, %arg1: i32, %arg2: i32) -> (i32, i32) {
    %c0_i32 = arith.constant 0 : i32
    return %arg0, %arg1 : i32, i32
  }
}

</mosaic_0001>

<bundles_post_ra>
// kernel: _linear_pallas.1
= control target key start
LH: loop header
LB: loop body
LE: loop exit
PB: predicated region body
PF: predicated region fallthrough
CT: control target
= control target key end

     0   :  { %8 = vsyncpa [#allocation4], 0  ;;  %s971_s0 = inlined_call_operand.hbm [shape: bf16[16,512], index: 0, kind: input, shape index: {}]   ;;  %s972_s1 = inlined_call_operand.hbm [shape: bf16[512,256], index: 1, kind: input, shape index: {}]   ;;  %s973_s2 = inlined_call_operand.hbm [shape: f32[1,256], index: 2, kind: input, shape index: {}]   ;;  %s974_s3 = inlined_call_operand.hbm [shape: f32[16,256], index: 3, kind: output, shape index: {}]  }
   0x1   :  { %9 = vsyncpa [#allocation7], 0 }
   0x2   :  { %10 = vsyncpa [#allocation5], 0  ;;  %s889_s12 = smov [#allocation6]   ;;  %s795_s16 = scalar_lea.hbm %s972_s1, 8192 }
   0x3   :  { %s28_s13 = sshll.u32 %s889_s12, 4  ;;  %p796_p0 = scmp.ne.s32.totalorder %s972_s1, %s795_s16  ;;  %s29_s13 = int_to_ptr.vmem [resolvable:$true] %s28_s13 }
   0x4   :  { %p799_p1 = scmp.lt.u32.totalorder %s795_s16, %s972_s1 }
   0x6   :  { %p801_p2 = pnand %p799_p1, %p796_p0 }
   0x8   :  { %804 = shalt.err (!%p801_p2)
}
   0x9   :  { %s805_s21 = scalar_lea.vmem %s29_s13, 8192  ;;  %p810_p4 = scmp.lt.s32.totalorder %s29_s13, %s29_s13 }
   0xa   :  { %p806_p3 = scmp.ne.s32.totalorder %s29_s13, %s805_s21  ;;  %p811_p5 = scmp.lt.s32.totalorder %s805_s21, %s805_s21 }
   0xc   :  { %p812_p6 = por %p811_p5, %p810_p4 }
   0xe   :  { %p813_p7 = pnand %p812_p6, %p806_p3 }
  0x10   :  { %816 = shalt.err (!%p813_p7)
}
  0x11   :  { %s890_s22 = smov 128   ;;  %s891_s23 = smov 8  }
  0x12   :  { %34 = dma.hbm_to_vmem [thread:$0]  %s972_s1, 8192, %s29_s13, [#allocation7], %s890_s22, %s890_s22, %s891_s23  }
  0x13   :  { %s892_s26 = smov [#allocation3]   ;;  %s817_s30 = scalar_lea.hbm %s971_s0, 512 }
  0x14   :  { %s16_s27 = sshll.u32 %s892_s26, 4  ;;  %p818_p8 = scmp.ne.s32.totalorder %s971_s0, %s817_s30  ;;  %s17_s27 = int_to_ptr.vmem [resolvable:$true] %s16_s27 }
  0x15   :  { %p821_p9 = scmp.lt.u32.totalorder %s817_s30, %s971_s0 }
  0x17   :  { %p823_p10 = pnand %p821_p9, %p818_p8 }
  0x19   :  { %826 = shalt.err (!%p823_p10)
}
  0x1a   :  { %s827_s8 = scalar_lea.vmem %s17_s27, 512  ;;  %p832_p12 = scmp.lt.s32.totalorder %s17_s27, %s17_s27 }
  0x1b   :  { %p828_p11 = scmp.ne.s32.totalorder %s17_s27, %s827_s8  ;;  %p833_p13 = scmp.lt.s32.totalorder %s827_s8, %s827_s8 }
  0x1d   :  { %p834_p0 = por %p833_p13, %p832_p12 }
  0x1f   :  { %p835_p1 = pnand %p834_p0, %p828_p11 }
  0x21   :  { %838 = shalt.err (!%p835_p1)
}
  0x22   :  { %s893_s1 = smov 256   ;;  %s894_s9 = smov 16  }
  0x23   :  { %22 = dma.hbm_to_vmem [thread:$0]  %s971_s0, 512, %s17_s27, [#allocation4], %s893_s1, %s893_s1, %s894_s9  }
  0x24   :  { %s895_s12 = smov [#allocation8]   ;;  %s839_s16 = scalar_lea.hbm %s973_s2, 32 }
  0x25   :  { %s41_s13 = sshll.u32 %s895_s12, 4  ;;  %p840_p2 = scmp.ne.s32.totalorder %s973_s2, %s839_s16  ;;  %s42_s13 = int_to_ptr.vmem [resolvable:$true] %s41_s13 }
  0x26   :  { %p843_p3 = scmp.lt.u32.totalorder %s839_s16, %s973_s2 }
  0x28   :  { %p845_p4 = pnand %p843_p3, %p840_p2 }
  0x2a   :  { %848 = shalt.err (!%p845_p4)
}
  0x2b   :  { %s849_s21 = scalar_lea.vmem %s42_s13, 32  ;;  %p854_p6 = scmp.lt.s32.totalorder %s42_s13, %s42_s13 }
  0x2c   :  { %p850_p5 = scmp.ne.s32.totalorder %s42_s13, %s849_s21  ;;  %p855_p7 = scmp.lt.s32.totalorder %s849_s21, %s849_s21 }
  0x2e   :  { %p856_p8 = por %p855_p7, %p854_p6 }
  0x30   :  { %p857_p9 = pnand %p856_p8, %p850_p5 }
  0x32   :  { %860 = shalt.err (!%p857_p9)
}
  0x33   :  { %44 = dma.hbm_to_vmem [thread:$0]  %s973_s2, 32, %s42_s13, [#allocation7]  }
  0x34   :  { %883 = dma.done.wait [#allocation4], 512  }
  0x35   :  { %884 = vsyncadd [#allocation4], 4294966784 }
  0x36   :  { %885 = dma.done.wait [#allocation7], 8224  }
  0x37   :  { %886 = vsyncadd [#allocation7], 4294959072  ;;  %v693_v0 = vld [vmem:[#allocation6 + $0x4] ss:$8 sps:$4 sm:$0xff]   ;;  %v697_v2 = vld [vmem:[#allocation6] ss:$8 sps:$4 sm:$0xff]  }
  0x38   :  { %v695_v1 = vld [vmem:[#allocation6 + $0x104] ss:$8 sps:$4 sm:$0xff]   ;;  %474 = vmatprep.subr.bf16.mxu1 %v693_v0  ;;  %v698_v3 = vld [vmem:[#allocation6 + $0x100] ss:$8 sps:$4 sm:$0xff]   ;;  %v699_v4 = vld [vmem:[#allocation6 + $0x14] ss:$8 sps:$4 sm:$0xff]  }
  0x39   :  { %517 = vmatprep.subr.bf16.mxu0 %v695_v1  ;;  %475 = vmatpush1.bf16.msra.mxu1 %v697_v2  ;;  %v701_v5 = vld [vmem:[#allocation6 + $0x114] ss:$8 sps:$4 sm:$0xff]   ;;  %v703_v6 = vld [vmem:[#allocation6 + $0x10] ss:$8 sps:$4 sm:$0xff]   ;;  %v705_v8 = vld [vmem:[#allocation6 + $0x24] ss:$8 sps:$4 sm:$0xff]  }
  0x3a   :  { %518 = vmatpush1.bf16.msra.mxu0 %v698_v3  ;;  %476 = vmatprep.subr.bf16.mxu1 %v699_v4  ;;  %v704_v7 = vld [vmem:[#allocation6 + $0x110] ss:$8 sps:$4 sm:$0xff]   ;;  %v707_v9 = vld [vmem:[#allocation6 + $0x124] ss:$8 sps:$4 sm:$0xff]   ;;  %v709_v10 = vld [vmem:[#allocation6 + $0x20] ss:$8 sps:$4 sm:$0xff]   ;;  %v577_v4 = vlaneseq }
  0x3b   :  { %519 = vmatprep.subr.bf16.mxu0 %v701_v5  ;;  %v710_v11 = vld [vmem:[#allocation6 + $0x120] ss:$8 sps:$4 sm:$0xff]   ;;  %v711_v12 = vld [vmem:[#allocation6 + $0x34] ss:$8 sps:$4 sm:$0xff]   ;;  %v715_v14 = vld [vmem:[#allocation6 + $0x30] ss:$8 sps:$4 sm:$0xff]  }
  0x3c   :  { %v713_v13 = vld [vmem:[#allocation6 + $0x134] ss:$8 sps:$4 sm:$0xff]   ;;  %v716_v15 = vld [vmem:[#allocation6 + $0x130] ss:$8 sps:$4 sm:$0xff]   ;;  %v717_v16 = vld [vmem:[#allocation6 + $0x44] ss:$8 sps:$4 sm:$0xff]  }
  0x3d   :  { %477 = vmatpush1.bf16.msra.mxu1 %v703_v6  ;;  %v719_v17 = vld [vmem:[#allocation6 + $0x144] ss:$8 sps:$4 sm:$0xff]   ;;  %v721_v18 = vld [vmem:[#allocation6 + $0x40] ss:$8 sps:$4 sm:$0xff]   ;;  %v723_v20 = vld [vmem:[#allocation6 + $0x54] ss:$8 sps:$4 sm:$0xff]  }
  0x3e   :  { %520 = vmatpush1.bf16.msra.mxu0 %v704_v7  ;;  %478 = vmatprep.subr.bf16.mxu1 %v705_v8  ;;  %v722_v19 = vld [vmem:[#allocation6 + $0x140] ss:$8 sps:$4 sm:$0xff]   ;;  %v725_v21 = vld [vmem:[#allocation6 + $0x154] ss:$8 sps:$4 sm:$0xff]   ;;  %v727_v22 = vld [vmem:[#allocation6 + $0x50] ss:$8 sps:$4 sm:$0xff]  }
  0x3f   :  { %521 = vmatprep.subr.bf16.mxu0 %v707_v9  ;;  %v728_v23 = vld [vmem:[#allocation6 + $0x150] ss:$8 sps:$4 sm:$0xff]   ;;  %v729_v24 = vld [vmem:[#allocation6 + $0x64] ss:$8 sps:$4 sm:$0xff]   ;;  %v733_v26 = vld [vmem:[#allocation6 + $0x60] ss:$8 sps:$4 sm:$0xff]  }
  0x40   :  { %v731_v25 = vld [vmem:[#allocation6 + $0x164] ss:$8 sps:$4 sm:$0xff]   ;;  %v734_v27 = vld [vmem:[#allocation6 + $0x160] ss:$8 sps:$4 sm:$0xff]   ;;  %v735_v28 = vld [vmem:[#allocation6 + $0x74] ss:$8 sps:$4 sm:$0xff]  }
  0x41   :  { %479 = vmatpush1.bf16.msra.mxu1 %v709_v10  ;;  %v737_v29 = vld [vmem:[#allocation6 + $0x174] ss:$8 sps:$4 sm:$0xff]   ;;  %v739_v30 = vld [vmem:[#allocation6 + $0x70] ss:$8 sps:$4 sm:$0xff]   ;;  %v741_v32 = vld [vmem:[#allocation6 + $0x84] ss:$8 sps:$4 sm:$0xff]  }
  0x42   :  { %522 = vmatpush1.bf16.msra.mxu0 %v710_v11  ;;  %480 = vmatprep.subr.bf16.mxu1 %v711_v12  ;;  %v740_v31 = vld [vmem:[#allocation6 + $0x170] ss:$8 sps:$4 sm:$0xff]   ;;  %v743_v33 = vld [vmem:[#allocation6 + $0x184] ss:$8 sps:$4 sm:$0xff]   ;;  %v745_v34 = vld [vmem:[#allocation6 + $0x80] ss:$8 sps:$4 sm:$0xff]  }
  0x43   :  { %523 = vmatprep.subr.bf16.mxu0 %v713_v13  ;;  %v746_v35 = vld [vmem:[#allocation6 + $0x180] ss:$8 sps:$4 sm:$0xff]   ;;  %v747_v36 = vld [vmem:[#allocation6 + $0x94] ss:$8 sps:$4 sm:$0xff]   ;;  %v751_v38 = vld [vmem:[#allocation6 + $0x90] ss:$8 sps:$4 sm:$0xff]  }
  0x44   :  { %v749_v37 = vld [vmem:[#allocation6 + $0x194] ss:$8 sps:$4 sm:$0xff]   ;;  %v752_v39 = vld [vmem:[#allocation6 + $0x190] ss:$8 sps:$4 sm:$0xff]   ;;  %v753_v40 = vld [vmem:[#allocation6 + $0xa4] ss:$8 sps:$4 sm:$0xff]  }
  0x45   :  { %481 = vmatpush1.bf16.msra.mxu1 %v715_v14  ;;  %v755_v41 = vld [vmem:[#allocation6 + $0x1a4] ss:$8 sps:$4 sm:$0xff]   ;;  %v757_v42 = vld [vmem:[#allocation6 + $0xa0] ss:$8 sps:$4 sm:$0xff]   ;;  %v759_v44 = vld [vmem:[#allocation6 + $0xb4] ss:$8 sps:$4 sm:$0xff]  }
  0x46   :  { %524 = vmatpush1.bf16.msra.mxu0 %v716_v15  ;;  %482 = vmatprep.subr.bf16.mxu1 %v717_v16  ;;  %v758_v43 = vld [vmem:[#allocation6 + $0x1a0] ss:$8 sps:$4 sm:$0xff]   ;;  %v761_v45 = vld [vmem:[#allocation6 + $0x1b4] ss:$8 sps:$4 sm:$0xff]   ;;  %v763_v46 = vld [vmem:[#allocation6 + $0xb0] ss:$8 sps:$4 sm:$0xff]  }
  0x47   :  { %525 = vmatprep.subr.bf16.mxu0 %v719_v17  ;;  %v791_v47 = vld [vmem:[#allocation3 + $0x4] ss:$16 sps:$4 sm:$0xff]   ;;  %v764_v48 = vld [vmem:[#allocation6 + $0x1b0] ss:$8 sps:$4 sm:$0xff]   ;;  %v794_v51 = vld [vmem:[#allocation3 + $0xc] ss:$16 sps:$4 sm:$0xff]  }
  0x48   :  { %v765_v49 = vld [vmem:[#allocation6 + $0xc4] ss:$8 sps:$4 sm:$0xff]   ;;  %506 = vmatprep.mubr.bf16.mxu1 %v791_v47  ;;  %549 = vmatprep.mubr.bf16.mxu0 %v794_v51  ;;  %v769_v52 = vld [vmem:[#allocation6 + $0xc0] ss:$8 sps:$4 sm:$0xff]   ;;  %v771_v54 = vld [vmem:[#allocation6 + $0xd4] ss:$8 sps:$4 sm:$0xff]  }
  0x49   :  { %483 = vmatpush1.bf16.msra.mxu1 %v721_v18  ;;  %v767_v50 = vld [vmem:[#allocation6 + $0x1c4] ss:$8 sps:$4 sm:$0xff]   ;;  %v770_v53 = vld [vmem:[#allocation6 + $0x1c0] ss:$8 sps:$4 sm:$0xff]   ;;  %v773_v55 = vld [vmem:[#allocation6 + $0x1d4] ss:$8 sps:$4 sm:$0xff]  }
  0x4a   :  { %526 = vmatpush1.bf16.msra.mxu0 %v722_v19  ;;  %484 = vmatprep.subr.bf16.mxu1 %v723_v20  ;;  %v775_v56 = vld [vmem:[#allocation6 + $0xd0] ss:$8 sps:$4 sm:$0xff]   ;;  %v777_v58 = vld [vmem:[#allocation6 + $0xe4] ss:$8 sps:$4 sm:$0xff]   ;;  %v781_v60 = vld [vmem:[#allocation6 + $0xe0] ss:$8 sps:$4 sm:$0xff]  }
  0x4b   :  { %527 = vmatprep.subr.bf16.mxu0 %v725_v21  ;;  %v776_v57 = vld [vmem:[#allocation6 + $0x1d0] ss:$8 sps:$4 sm:$0xff]   ;;  %v779_v59 = vld [vmem:[#allocation6 + $0x1e4] ss:$8 sps:$4 sm:$0xff]   ;;  %v782_v61 = vld [vmem:[#allocation6 + $0x1e0] ss:$8 sps:$4 sm:$0xff]  }
  0x4c   :  { %v783_v62 = vld [vmem:[#allocation6 + $0xf4] ss:$8 sps:$4 sm:$0xff]   ;;  %v787_v0 = vld [vmem:[#allocation6 + $0xf0] ss:$8 sps:$4 sm:$0xff]   ;;  %v578_v5 = vshrl.u32 %v577_v4, 7  ;;  %s896_s2 = smov [#allocation9]  }
  0x4d   :  { %485 = vmatpush1.bf16.msra.mxu1 %v727_v22  ;;  %v785_v63 = vld [vmem:[#allocation6 + $0x1f4] ss:$8 sps:$4 sm:$0xff]   ;;  %v788_v1 = vld [vmem:[#allocation6 + $0x1f0] ss:$8 sps:$4 sm:$0xff]   ;;  %v575_v7 = vld [vmem:[#allocation8] sm:$0x3] }
  0x4e   :  { %528 = vmatpush1.bf16.msra.mxu0 %v728_v23  ;;  %486 = vmatprep.subr.bf16.mxu1 %v729_v24  ;;  %v789_v2 = vld [vmem:[#allocation3] ss:$16 sps:$4 sm:$0xff]   ;;  %v792_v3 = vld [vmem:[#allocation3 + $0x8] ss:$16 sps:$4 sm:$0xff]   ;;  %v579_v6 = vsub.s32 0, %v578_v5  ;;  %v583_v8 = vsub.s32 1, %v578_v5 }
  0x4f   :  { %529 = vmatprep.subr.bf16.mxu0 %v731_v25  ;;  %s600_s23 = sshll.u32 %s896_s2, 4  ;;  %s601_s23 = int_to_ptr.vmem [resolvable:$true] %s600_s23 }
  0x50   :  { %v580_v9 = vrot.slane %v575_v7, %v579_v6  ;;  %v584_v12 = vrot.slane %v575_v7, %v583_v8  ;;  %s861_s24 = scalar_lea.vmem %s601_s23, 512  ;;  %p866_p11 = scmp.lt.s32.totalorder %s601_s23, %s601_s23 }
  0x51   :  { %487 = vmatpush1.bf16.msra.mxu1 %v733_v26  ;;  %p862_p10 = scmp.ne.s32.totalorder %s601_s23, %s861_s24  ;;  %p867_p12 = scmp.lt.s32.totalorder %s861_s24, %s861_s24 }
  0x52   :  { %530 = vmatpush1.bf16.msra.mxu0 %v734_v27  ;;  %488 = vmatprep.subr.bf16.mxu1 %v735_v28 }
  0x53   :  { %531 = vmatprep.subr.bf16.mxu0 %v737_v29  ;;  %p868_p13 = por %p867_p12, %p866_p11 }
  0x55   :  { %489 = vmatpush1.bf16.msra.mxu1 %v739_v30  ;;  %p869_p0 = pnand %p868_p13, %p862_p10 }
  0x56   :  { %532 = vmatpush1.bf16.msra.mxu0 %v740_v31  ;;  %490 = vmatprep.subr.bf16.mxu1 %v741_v32 }
  0x57   :  { %533 = vmatprep.subr.bf16.mxu0 %v743_v33 }
  0x59   :  { %491 = vmatpush1.bf16.msra.mxu1 %v745_v34 }
  0x5a   :  { %534 = vmatpush1.bf16.msra.mxu0 %v746_v35  ;;  %492 = vmatprep.subr.bf16.mxu1 %v747_v36 }
  0x5b   :  { %535 = vmatprep.subr.bf16.mxu0 %v749_v37 }
  0x5d   :  { %493 = vmatpush1.bf16.msra.mxu1 %v751_v38 }
  0x5e   :  { %536 = vmatpush1.bf16.msra.mxu0 %v752_v39  ;;  %494 = vmatprep.subr.bf16.mxu1 %v753_v40 }
  0x5f   :  { %537 = vmatprep.subr.bf16.mxu0 %v755_v41 }
  0x61   :  { %495 = vmatpush1.bf16.msra.mxu1 %v757_v42 }
  0x62   :  { %538 = vmatpush1.bf16.msra.mxu0 %v758_v43  ;;  %496 = vmatprep.subr.bf16.mxu1 %v759_v44 }
  0x63   :  { %539 = vmatprep.subr.bf16.mxu0 %v761_v45 }
  0x65   :  { %497 = vmatpush1.bf16.msra.mxu1 %v763_v46 }
  0x66   :  { %540 = vmatpush1.bf16.msra.mxu0 %v764_v48  ;;  %498 = vmatprep.subr.bf16.mxu1 %v765_v49 }
  0x67   :  { %541 = vmatprep.subr.bf16.mxu0 %v767_v50 }
  0x69   :  { %499 = vmatpush1.bf16.msra.mxu1 %v769_v52 }
  0x6a   :  { %542 = vmatpush1.bf16.msra.mxu0 %v770_v53  ;;  %500 = vmatprep.subr.bf16.mxu1 %v771_v54 }
  0x6b   :  { %543 = vmatprep.subr.bf16.mxu0 %v773_v55 }
  0x6d   :  { %501 = vmatpush1.bf16.msra.mxu1 %v775_v56 }
  0x6e   :  { %544 = vmatpush1.bf16.msra.mxu0 %v776_v57  ;;  %502 = vmatprep.subr.bf16.mxu1 %v777_v58 }
  0x6f   :  { %545 = vmatprep.subr.bf16.mxu0 %v779_v59 }
  0x71   :  { %503 = vmatpush1.bf16.msra.mxu1 %v781_v60 }
  0x72   :  { %546 = vmatpush1.bf16.msra.mxu0 %v782_v61  ;;  %504 = vmatprep.subr.bf16.mxu1 %v783_v62 }
  0x73   :  { %547 = vmatprep.subr.bf16.mxu0 %v785_v63 }
  0x75   :  { %505 = vmatpush1.bf16.msra.mxu1 %v787_v0 }
  0x76   :  { %548 = vmatpush1.bf16.msra.mxu0 %v788_v1 }
  0x78   :  { %507 = vmatmul.mubr.bf16.vlgmr.msra.gmra.mrb[0].mxu1 %v789_v2 }
  0x79   :  { %550 = vmatmul.mubr.bf16.vlgmr.msra.gmra.mrb[0].mxu0 %v792_v3 }
 0x14b   :  { %v508_v10 = vpop.f32.mrb[0].mxu1 }
 0x14c   :  { %v551_v11 = vpop.f32.mrb[0].mxu0  ;;  %v510_v14 = vpop.f32.mrb[1].mxu1 }
 0x14d   :  { %v552_v13 = vadd.f32 %v551_v11, %v508_v10  ;;  %v553_v15 = vpop.f32.mrb[1].mxu0  ;;  %v512_v17 = vpop.f32.mrb[2].mxu1 }
 0x14e   :  { %v554_v16 = vadd.f32 %v553_v15, %v510_v14  ;;  %v555_v18 = vpop.f32.mrb[2].mxu0  ;;  %v514_v21 = vpop.f32.mrb[3].mxu1 }
 0x14f   :  { %v587_v19 = vadd.f32 %v580_v9, %v552_v13  ;;  %v556_v20 = vadd.f32 %v555_v18, %v512_v17  ;;  %v557_v22 = vpop.f32.mrb[3].mxu0 }
 0x150   :  { %v588_v23 = vadd.f32 %v584_v12, %v554_v16  ;;  %v558_v24 = vadd.f32 %v557_v22, %v514_v21 }
 0x151   :  { %591 = vst [vmem:[#allocation9] sm:$0xff] %v587_v19  ;;  %v589_v25 = vadd.f32 %v580_v9, %v556_v20 }
 0x152   :  { %592 = vst [vmem:[#allocation9 + $0x8] sm:$0xff] %v588_v23  ;;  %v590_v26 = vadd.f32 %v584_v12, %v558_v24 }
 0x153   :  { %593 = vst [vmem:[#allocation9 + $0x10] sm:$0xff] %v589_v25 }
 0x154   :  { %594 = vst [vmem:[#allocation9 + $0x18] sm:$0xff] %v590_v26 }
 0x155   :  { %872 = shalt.err (!%p869_p0)
}
 0x156   :  { %s873_s27 = scalar_lea.hbm %s974_s3, 512 }
 0x157   :  { %p874_p1 = scmp.ne.s32.totalorder %s974_s3, %s873_s27  ;;  %p877_p2 = scmp.lt.u32.totalorder %s873_s27, %s974_s3 }
 0x159   :  { %p879_p3 = pnand %p877_p2, %p874_p1 }
 0x15b   :  { %882 = shalt.err (!%p879_p3)
}
 0x15c   :  { %606 = dma.vmem_to_hbm [thread:$0]  %s601_s23, 512, %s974_s3, [#allocation5], %s893_s1, %s893_s1, %s894_s9  }
 0x15d   :  { %887 = dma.done.wait [#allocation5], 512  }
 0x15e   :  { %888 = vsyncadd [#allocation5], 4294966784 }
 0x15f   :  { %610 = vsyncpa [#allocation4], 1 }
 0x160   :  { %611 = vsyncpa [#allocation7], 1 }
 0x161   :  { %612 = vsyncpa [#allocation5], 1 }

</bundles_post_ra>
